<compile_context>
chip_gen: v5e
topology: v5e:2x2
jax: 0.10.0
libtpu: 0.0.40
codegen_flags: <defaults>
</compile_context>

<pallas_src>
import functools
import math

import jax
import jax.numpy as jnp
from jax import lax
from jax.experimental import pallas as pl
from jax.experimental.pallas import tpu as pltpu


# dot_general dimension numbers for A @ B^T (contract last dims of both).
_NT_DIMS = (((1,), (1,)), ((), ()))


def mha_kernel(q_ref, k_ref, v_ref, mask_ref, wo_ref, bo_ref, out_ref, *,
               num_heads):
    """Fused attention core + output projection for one query tile.

    q_ref   : (H, tq, dh) bf16  pre-projected, pre-scaled queries (this tile)
    k_ref   : (H, T,  dh) bf16  pre-projected keys   (full sequence, resident)
    v_ref   : (H, T,  dh) bf16  pre-projected values (full sequence, resident)
    mask_ref: (tq, 1)     f32   1-D mask rows of this query tile
    wo_ref  : (H, dh, D)  bf16  output projection split per head
    bo_ref  : (1, D)      f32
    out_ref : (tq, D)     f32
    """
    tq = q_ref.shape[1]
    d_model = wo_ref.shape[2]

    # Reference quirk: the 1-D (T,) mask aligns to the QUERY axis of the
    # (H, T, T_key) scores, i.e. whole rows are masked_fill'ed with -1e20.
    # Replacement semantics are required (masked rows -> uniform softmax).
    is_masked = mask_ref[...] == 0.0            # (tq, 1), broadcasts along keys
    neg = jnp.float32(-1e20)

    def head_body(h, acc):
        qh = q_ref[h]                           # (tq, dh) bf16
        kh = k_ref[h]                           # (T,  dh) bf16
        vh = v_ref[h]                           # (T,  dh) bf16

        # Q @ K^T with the transpose folded into the MXU operand feed.
        s = lax.dot_general(qh, kh, _NT_DIMS,
                            preferred_element_type=jnp.float32)    # (tq, T)
        s = jnp.where(is_masked, neg, s)

        # Numerically-stable softmax over T_key; divide runs on the EUP slot.
        s = s - jnp.max(s, axis=-1, keepdims=True)
        e = jnp.exp(s)
        p = e * pl.reciprocal(jnp.sum(e, axis=-1, keepdims=True), approx=True)

        ah = jnp.dot(p.astype(jnp.bfloat16), vh,
                     preferred_element_type=jnp.float32)           # (tq, dh)
        # Fold this head's slice of the output projection straight into the
        # accumulator: sum_h A_h @ Wo_h == concat_h(A_h) @ Wo (no concat).
        return acc + jnp.dot(ah.astype(jnp.bfloat16), wo_ref[h],
                             preferred_element_type=jnp.float32)   # (tq, D)

    acc0 = jnp.zeros((tq, d_model), jnp.float32)
    acc = lax.fori_loop(0, num_heads, head_body, acc0,
                        unroll=num_heads <= 8)
    out_ref[...] = acc + bo_ref[...]


def multi_head_attention(query, mask, params, num_heads):
    T, D = query.shape
    assert D % num_heads == 0
    dh = D // num_heads
    # (1/sqrt(dh)) is applied twice in the reference (Q.div_ then scores/scale);
    # fold both into the Q projection weights/bias (zero runtime cost).
    inv_scale2 = 1.0 / float(dh)

    # ---- projections hoisted out of the kernel grid (one GEMM each, f32) ----
    q = query @ (params["wq"] * inv_scale2) + params["bq"] * inv_scale2
    k = query @ params["wk"] + params["bk"]
    v = query @ params["wv"] + params["bv"]

    def to_heads(t):                            # (T, D) -> (H, T, dh)
        return t.reshape(T, num_heads, dh).transpose(1, 0, 2)

    q_h = to_heads(q).astype(jnp.bfloat16)
    k_h = to_heads(k).astype(jnp.bfloat16)
    v_h = to_heads(v).astype(jnp.bfloat16)
    wo3 = params["wo"].reshape(num_heads, dh, D).astype(jnp.bfloat16)
    bo = params["bo"].reshape(1, D).astype(jnp.float32)
    mask2d = mask.astype(jnp.float32).reshape(T, 1)

    # ---- query tiling: largest tile up to 512 rows that divides T ----
    if T <= 512:
        tq = T
    else:
        tq = next((c for c in (512, 256, 128) if T % c == 0), T)
    grid = (T // tq,)
    # TODO(synk): for large T, stream K/V key tiles with a second "arbitrary"
    # grid axis + online softmax (flash-style) instead of keeping the full
    # bf16 K/V resident; needed on v7x's 64 MiB/TC once T*D grows past ~8 MiB.

    # ---- VMEM budget: resident K/V/Wo + (worst case double-buffered) tiles
    #      + in-flight temporaries, clamped below v7x's 64 MiB/TC ----
    resident = (2 * num_heads * T * dh * 2        # K, V (bf16)
                + num_heads * dh * D * 2          # Wo   (bf16)
                + D * 4)                          # bo   (f32)
    per_tile = (num_heads * tq * dh * 2           # Q tile (bf16)
                + tq * 4                          # mask tile
                + tq * D * 4)                     # out tile (f32)
    temporaries = 4 * tq * T * 4 + tq * D * 4     # scores/exp + accumulator
    vmem_bytes = 2 * (resident + per_tile) + temporaries + (4 << 20)
    vmem_bytes = int(min(max(vmem_bytes, 16 << 20), 48 << 20))
    # NOTE: the constant-index resident operands (K, V, Wo, bo) could be
    # single-buffered via pipeline_mode=pl.Buffered(1) to halve their VMEM
    # footprint on v7x; left at the default here for toolchain portability.

    kernel = functools.partial(mha_kernel, num_heads=num_heads)

    return pl.pallas_call(
        kernel,
        out_shape=jax.ShapeDtypeStruct((T, D), jnp.float32),
        grid_spec=pltpu.PrefetchScalarGridSpec(
            num_scalar_prefetch=0,
            grid=grid,
            in_specs=[
                pl.BlockSpec((num_heads, tq, dh), lambda i: (0, i, 0)),  # Q tile
                pl.BlockSpec((num_heads, T, dh), lambda i: (0, 0, 0)),   # K resident
                pl.BlockSpec((num_heads, T, dh), lambda i: (0, 0, 0)),   # V resident
                pl.BlockSpec((tq, 1), lambda i: (i, 0)),                 # mask tile
                pl.BlockSpec((num_heads, dh, D), lambda i: (0, 0, 0)),   # Wo resident
                pl.BlockSpec((1, D), lambda i: (0, 0)),                  # bo
            ],
            out_specs=pl.BlockSpec((tq, D), lambda i: (i, 0)),
        ),
        compiler_params=pltpu.CompilerParams(
            dimension_semantics=("parallel",),   # query tiles shard on v7x's 2 TCs
            vmem_limit_bytes=vmem_bytes,
        ),
    )(q_h, k_h, v_h, mask2d, wo3, bo)


def reference_mha(query, mask, params, num_heads):
    """Pure-JAX fp32 reference mirroring the PyTorch forward exactly."""
    T, D = query.shape
    dph = D // num_heads
    scale = math.sqrt(dph)
    Q = query @ params["wq"] + params["bq"]
    K = query @ params["wk"] + params["bk"]
    V = query @ params["wv"] + params["bv"]

    def heads(t):
        return t.reshape(T, num_heads, dph).transpose(1, 0, 2)  # (H, T, dph)

    Qh, Kh, Vh = heads(Q) / scale, heads(K), heads(V)
    scores = Qh @ jnp.swapaxes(Kh, -1, -2)                       # (H, T, T_key)
    scores = jnp.where((mask == 0)[None, :, None], -1e20, scores)
    attn = jax.nn.softmax(scores / scale, axis=-1)
    out = (attn @ Vh).transpose(1, 0, 2).reshape(T, D)
    return out @ params["wo"] + params["bo"]


def init_params(key, dim):
    """Deterministic init: xavier-normal weights (as in the module), PyTorch-style
    uniform biases.  Weights are stored already transposed as (in, out)."""
    ks = jax.random.split(key, 8)
    std = math.sqrt(2.0 / (dim + dim))          # xavier_normal_ for square Linear
    bbound = 1.0 / math.sqrt(dim)               # default torch Linear bias init
    params = {}
    for i, name in enumerate(("q", "k", "v", "o")):
        params[f"w{name}"] = std * jax.random.normal(ks[2 * i], (dim, dim),
                                                     jnp.float32)
        params[f"b{name}"] = jax.random.uniform(
            ks[2 * i + 1], (dim,), jnp.float32, minval=-bbound, maxval=bbound)
    return params


if __name__ == "__main__":
    T, D, H = 8, 32, 4   # seq len, model dim, num heads  (dim_per_head = 8)

    root = jax.random.PRNGKey(0)
    k_q, k_p = jax.random.split(root)

    query = jax.random.normal(k_q, (T, D), jnp.float32)
    mask = jnp.ones((T,), jnp.float32)          # matches `torch.ones(T)`
    params = init_params(k_p, D)

    out = multi_head_attention(query, mask, params, num_heads=H)
    out = jax.block_until_ready(out)

    ref = reference_mha(query, mask, params, num_heads=H)
    assert out.shape == (T, D)
    # bf16 MXU operands + approx reciprocal vs fp32 reference -> loose tolerance.
    assert jnp.allclose(out, ref, atol=5e-2, rtol=5e-2), "mismatch vs JAX reference"

    # TODO(synk): attnDropout has p=0 in the reference usage, so it is the
    # identity and is intentionally omitted from the kernel.
    print("KERNEL_OK")
</pallas_src>

<mosaic_0001>
module attributes {stable_mosaic.version = 11 : i64} {
  func.func @mha_kernel(%arg0: i32, %arg1: memref<4x8x8xbf16, #tpu.memory_space<vmem>>, %arg2: memref<4x8x8xbf16, #tpu.memory_space<vmem>>, %arg3: memref<4x8x8xbf16, #tpu.memory_space<vmem>>, %arg4: memref<8x1xf32, #tpu.memory_space<vmem>>, %arg5: memref<4x8x32xbf16, #tpu.memory_space<vmem>>, %arg6: memref<1x32xf32, #tpu.memory_space<vmem>>, %arg7: memref<8x32xf32, #tpu.memory_space<vmem>>) attributes {dimension_semantics = [#tpu.dimension_semantics<parallel>], iteration_bounds = array<i64: 1>, scalar_prefetch = 0 : i64, scratch_operands = 0 : i64, tpu.core_type = #tpu.core_type<tc>, window_params = [{transform_indices = @transform_0, window_bounds = array<i64: 4, 8, 8>}, {pipeline_mode = #tpu.pipeline_mode<synchronous>, transform_indices = @transform_1, window_bounds = array<i64: 4, 8, 8>}, {pipeline_mode = #tpu.pipeline_mode<synchronous>, transform_indices = @transform_2, window_bounds = array<i64: 4, 8, 8>}, {transform_indices = @transform_3, window_bounds = array<i64: 8, 1>}, {pipeline_mode = #tpu.pipeline_mode<synchronous>, transform_indices = @transform_4, window_bounds = array<i64: 4, 8, 32>}, {pipeline_mode = #tpu.pipeline_mode<synchronous>, transform_indices = @transform_5, window_bounds = array<i64: 1, 32>}, {transform_indices = @transform_6, window_bounds = array<i64: 8, 32>}]} {
    %c0 = arith.constant 0 : index
    %c0_0 = arith.constant 0 : index
    %0 = vector.load %arg4[%c0, %c0_0] : memref<8x1xf32, #tpu.memory_space<vmem>>, vector<8x1xf32>
    %cst = arith.constant 0.000000e+00 : f32
    %1 = vector.broadcast %cst : f32 to vector<8x1xf32>
    %2 = arith.cmpf oeq, %0, %1 : vector<8x1xf32>
    %cst_1 = arith.constant 0.000000e+00 : f32
    %3 = vector.broadcast %cst_1 : f32 to vector<8x32xf32>
    %cst_2 = arith.constant -1.000000e+20 : f32
    %c0_i32 = arith.constant 0 : i32
    %4 = arith.index_cast %c0_i32 : i32 to index
    %c0_3 = arith.constant 0 : index
    %c0_4 = arith.constant 0 : index
    %5 = vector.load %arg1[%4, %c0_3, %c0_4] : memref<4x8x8xbf16, #tpu.memory_space<vmem>>, vector<1x8x8xbf16>
    %6 = vector.shape_cast %5 : vector<1x8x8xbf16> to vector<8x8xbf16>
    %7 = arith.index_cast %c0_i32 : i32 to index
    %c0_5 = arith.constant 0 : index
    %c0_6 = arith.constant 0 : index
    %8 = vector.load %arg2[%7, %c0_5, %c0_6] : memref<4x8x8xbf16, #tpu.memory_space<vmem>>, vector<1x8x8xbf16>
    %9 = vector.shape_cast %8 : vector<1x8x8xbf16> to vector<8x8xbf16>
    %10 = arith.index_cast %c0_i32 : i32 to index
    %c0_7 = arith.constant 0 : index
    %c0_8 = arith.constant 0 : index
    %11 = vector.load %arg3[%10, %c0_7, %c0_8] : memref<4x8x8xbf16, #tpu.memory_space<vmem>>, vector<1x8x8xbf16>
    %12 = vector.shape_cast %11 : vector<1x8x8xbf16> to vector<8x8xbf16>
    %cst_9 = arith.constant dense<0.000000e+00> : vector<8x8xf32>
    %13 = tpu.matmul %6, %9, %cst_9 {dimension_numbers = #tpu.dot_dimension_numbers<[1], [1], [0], [0], [0, 0, 1, 0], [], []>} : vector<8x8xbf16>, vector<8x8xbf16>, vector<8x8xf32> -> vector<8x8xf32>
    %14 = vector.shape_cast %2 : vector<8x1xi1> to vector<8x1xi1>
    %15 = vector.broadcast %14 : vector<8x1xi1> to vector<8x8xi1>
    %16 = vector.broadcast %cst_2 : f32 to vector<8x8xf32>
    %17 = arith.select %15, %16, %13 : vector<8x8xi1>, vector<8x8xf32>
    %cst_10 = arith.constant dense<0xFF800000> : vector<8xf32>
    %18 = vector.multi_reduction <maximumf>, %17, %cst_10 [1] : vector<8x8xf32> to vector<8xf32>
    %19 = vector.shape_cast %18 : vector<8xf32> to vector<8x1xf32>
    %20 = vector.broadcast %19 : vector<8x1xf32> to vector<8x8xf32>
    %21 = arith.subf %17, %20 : vector<8x8xf32>
    %22 = math.exp %21 : vector<8x8xf32>
    %cst_11 = arith.constant dense<0.000000e+00> : vector<8xf32>
    %23 = vector.multi_reduction <add>, %22, %cst_11 [1] : vector<8x8xf32> to vector<8xf32>
    %24 = vector.shape_cast %23 : vector<8xf32> to vector<8x1xf32>
    %25 = tpu.reciprocal %24 {approx = true} : vector<8x1xf32> -> vector<8x1xf32>
    %26 = vector.broadcast %25 : vector<8x1xf32> to vector<8x8xf32>
    %27 = arith.mulf %22, %26 : vector<8x8xf32>
    %28 = arith.truncf %27 : vector<8x8xf32> to vector<8x8xbf16>
    %cst_12 = arith.constant dense<0.000000e+00> : vector<8x8xf32>
    %29 = tpu.matmul %28, %12, %cst_12 {dimension_numbers = #tpu.dot_dimension_numbers<[1], [0], [0], [1], [0, 0, 1, 1], [], []>} : vector<8x8xbf16>, vector<8x8xbf16>, vector<8x8xf32> -> vector<8x8xf32>
    %30 = arith.truncf %29 : vector<8x8xf32> to vector<8x8xbf16>
    %31 = arith.index_cast %c0_i32 : i32 to index
    %c0_13 = arith.constant 0 : index
    %c0_14 = arith.constant 0 : index
    %32 = vector.load %arg5[%31, %c0_13, %c0_14] : memref<4x8x32xbf16, #tpu.memory_space<vmem>>, vector<1x8x32xbf16>
    %33 = vector.shape_cast %32 : vector<1x8x32xbf16> to vector<8x32xbf16>
    %cst_15 = arith.constant dense<0.000000e+00> : vector<8x32xf32>
    %34 = tpu.matmul %30, %33, %cst_15 {dimension_numbers = #tpu.dot_dimension_numbers<[1], [0], [0], [1], [0, 0, 1, 1], [], []>} : vector<8x8xbf16>, vector<8x32xbf16>, vector<8x32xf32> -> vector<8x32xf32>
    %35 = arith.addf %3, %34 : vector<8x32xf32>
    %c1_i32 = arith.constant 1 : i32
    %36 = arith.index_cast %c1_i32 : i32 to index
    %c0_16 = arith.constant 0 : index
    %c0_17 = arith.constant 0 : index
    %37 = vector.load %arg1[%36, %c0_16, %c0_17] : memref<4x8x8xbf16, #tpu.memory_space<vmem>>, vector<1x8x8xbf16>
    %38 = vector.shape_cast %37 : vector<1x8x8xbf16> to vector<8x8xbf16>
    %39 = arith.index_cast %c1_i32 : i32 to index
    %c0_18 = arith.constant 0 : index
    %c0_19 = arith.constant 0 : index
    %40 = vector.load %arg2[%39, %c0_18, %c0_19] : memref<4x8x8xbf16, #tpu.memory_space<vmem>>, vector<1x8x8xbf16>
    %41 = vector.shape_cast %40 : vector<1x8x8xbf16> to vector<8x8xbf16>
    %42 = arith.index_cast %c1_i32 : i32 to index
    %c0_20 = arith.constant 0 : index
    %c0_21 = arith.constant 0 : index
    %43 = vector.load %arg3[%42, %c0_20, %c0_21] : memref<4x8x8xbf16, #tpu.memory_space<vmem>>, vector<1x8x8xbf16>
    %44 = vector.shape_cast %43 : vector<1x8x8xbf16> to vector<8x8xbf16>
    %cst_22 = arith.constant dense<0.000000e+00> : vector<8x8xf32>
    %45 = tpu.matmul %38, %41, %cst_22 {dimension_numbers = #tpu.dot_dimension_numbers<[1], [1], [0], [0], [0, 0, 1, 0], [], []>} : vector<8x8xbf16>, vector<8x8xbf16>, vector<8x8xf32> -> vector<8x8xf32>
    %46 = vector.shape_cast %2 : vector<8x1xi1> to vector<8x1xi1>
    %47 = vector.broadcast %46 : vector<8x1xi1> to vector<8x8xi1>
    %48 = vector.broadcast %cst_2 : f32 to vector<8x8xf32>
    %49 = arith.select %47, %48, %45 : vector<8x8xi1>, vector<8x8xf32>
    %cst_23 = arith.constant dense<0xFF800000> : vector<8xf32>
    %50 = vector.multi_reduction <maximumf>, %49, %cst_23 [1] : vector<8x8xf32> to vector<8xf32>
    %51 = vector.shape_cast %50 : vector<8xf32> to vector<8x1xf32>
    %52 = vector.broadcast %51 : vector<8x1xf32> to vector<8x8xf32>
    %53 = arith.subf %49, %52 : vector<8x8xf32>
    %54 = math.exp %53 : vector<8x8xf32>
    %cst_24 = arith.constant dense<0.000000e+00> : vector<8xf32>
    %55 = vector.multi_reduction <add>, %54, %cst_24 [1] : vector<8x8xf32> to vector<8xf32>
    %56 = vector.shape_cast %55 : vector<8xf32> to vector<8x1xf32>
    %57 = tpu.reciprocal %56 {approx = true} : vector<8x1xf32> -> vector<8x1xf32>
    %58 = vector.broadcast %57 : vector<8x1xf32> to vector<8x8xf32>
    %59 = arith.mulf %54, %58 : vector<8x8xf32>
    %60 = arith.truncf %59 : vector<8x8xf32> to vector<8x8xbf16>
    %cst_25 = arith.constant dense<0.000000e+00> : vector<8x8xf32>
    %61 = tpu.matmul %60, %44, %cst_25 {dimension_numbers = #tpu.dot_dimension_numbers<[1], [0], [0], [1], [0, 0, 1, 1], [], []>} : vector<8x8xbf16>, vector<8x8xbf16>, vector<8x8xf32> -> vector<8x8xf32>
    %62 = arith.truncf %61 : vector<8x8xf32> to vector<8x8xbf16>
    %63 = arith.index_cast %c1_i32 : i32 to index
    %c0_26 = arith.constant 0 : index
    %c0_27 = arith.constant 0 : index
    %64 = vector.load %arg5[%63, %c0_26, %c0_27] : memref<4x8x32xbf16, #tpu.memory_space<vmem>>, vector<1x8x32xbf16>
    %65 = vector.shape_cast %64 : vector<1x8x32xbf16> to vector<8x32xbf16>
    %cst_28 = arith.constant dense<0.000000e+00> : vector<8x32xf32>
    %66 = tpu.matmul %62, %65, %cst_28 {dimension_numbers = #tpu.dot_dimension_numbers<[1], [0], [0], [1], [0, 0, 1, 1], [], []>} : vector<8x8xbf16>, vector<8x32xbf16>, vector<8x32xf32> -> vector<8x32xf32>
    %67 = arith.addf %35, %66 : vector<8x32xf32>
    %c2_i32 = arith.constant 2 : i32
    %68 = arith.index_cast %c2_i32 : i32 to index
    %c0_29 = arith.constant 0 : index
    %c0_30 = arith.constant 0 : index
    %69 = vector.load %arg1[%68, %c0_29, %c0_30] : memref<4x8x8xbf16, #tpu.memory_space<vmem>>, vector<1x8x8xbf16>
    %70 = vector.shape_cast %69 : vector<1x8x8xbf16> to vector<8x8xbf16>
    %71 = arith.index_cast %c2_i32 : i32 to index
    %c0_31 = arith.constant 0 : index
    %c0_32 = arith.constant 0 : index
    %72 = vector.load %arg2[%71, %c0_31, %c0_32] : memref<4x8x8xbf16, #tpu.memory_space<vmem>>, vector<1x8x8xbf16>
    %73 = vector.shape_cast %72 : vector<1x8x8xbf16> to vector<8x8xbf16>
    %74 = arith.index_cast %c2_i32 : i32 to index
    %c0_33 = arith.constant 0 : index
    %c0_34 = arith.constant 0 : index
    %75 = vector.load %arg3[%74, %c0_33, %c0_34] : memref<4x8x8xbf16, #tpu.memory_space<vmem>>, vector<1x8x8xbf16>
    %76 = vector.shape_cast %75 : vector<1x8x8xbf16> to vector<8x8xbf16>
    %cst_35 = arith.constant dense<0.000000e+00> : vector<8x8xf32>
    %77 = tpu.matmul %70, %73, %cst_35 {dimension_numbers = #tpu.dot_dimension_numbers<[1], [1], [0], [0], [0, 0, 1, 0], [], []>} : vector<8x8xbf16>, vector<8x8xbf16>, vector<8x8xf32> -> vector<8x8xf32>
    %78 = vector.shape_cast %2 : vector<8x1xi1> to vector<8x1xi1>
    %79 = vector.broadcast %78 : vector<8x1xi1> to vector<8x8xi1>
    %80 = vector.broadcast %cst_2 : f32 to vector<8x8xf32>
    %81 = arith.select %79, %80, %77 : vector<8x8xi1>, vector<8x8xf32>
    %cst_36 = arith.constant dense<0xFF800000> : vector<8xf32>
    %82 = vector.multi_reduction <maximumf>, %81, %cst_36 [1] : vector<8x8xf32> to vector<8xf32>
    %83 = vector.shape_cast %82 : vector<8xf32> to vector<8x1xf32>
    %84 = vector.broadcast %83 : vector<8x1xf32> to vector<8x8xf32>
    %85 = arith.subf %81, %84 : vector<8x8xf32>
    %86 = math.exp %85 : vector<8x8xf32>
    %cst_37 = arith.constant dense<0.000000e+00> : vector<8xf32>
    %87 = vector.multi_reduction <add>, %86, %cst_37 [1] : vector<8x8xf32> to vector<8xf32>
    %88 = vector.shape_cast %87 : vector<8xf32> to vector<8x1xf32>
    %89 = tpu.reciprocal %88 {approx = true} : vector<8x1xf32> -> vector<8x1xf32>
    %90 = vector.broadcast %89 : vector<8x1xf32> to vector<8x8xf32>
    %91 = arith.mulf %86, %90 : vector<8x8xf32>
    %92 = arith.truncf %91 : vector<8x8xf32> to vector<8x8xbf16>
    %cst_38 = arith.constant dense<0.000000e+00> : vector<8x8xf32>
    %93 = tpu.matmul %92, %76, %cst_38 {dimension_numbers = #tpu.dot_dimension_numbers<[1], [0], [0], [1], [0, 0, 1, 1], [], []>} : vector<8x8xbf16>, vector<8x8xbf16>, vector<8x8xf32> -> vector<8x8xf32>
    %94 = arith.truncf %93 : vector<8x8xf32> to vector<8x8xbf16>
    %95 = arith.index_cast %c2_i32 : i32 to index
    %c0_39 = arith.constant 0 : index
    %c0_40 = arith.constant 0 : index
    %96 = vector.load %arg5[%95, %c0_39, %c0_40] : memref<4x8x32xbf16, #tpu.memory_space<vmem>>, vector<1x8x32xbf16>
    %97 = vector.shape_cast %96 : vector<1x8x32xbf16> to vector<8x32xbf16>
    %cst_41 = arith.constant dense<0.000000e+00> : vector<8x32xf32>
    %98 = tpu.matmul %94, %97, %cst_41 {dimension_numbers = #tpu.dot_dimension_numbers<[1], [0], [0], [1], [0, 0, 1, 1], [], []>} : vector<8x8xbf16>, vector<8x32xbf16>, vector<8x32xf32> -> vector<8x32xf32>
    %99 = arith.addf %67, %98 : vector<8x32xf32>
    %c3_i32 = arith.constant 3 : i32
    %100 = arith.index_cast %c3_i32 : i32 to index
    %c0_42 = arith.constant 0 : index
    %c0_43 = arith.constant 0 : index
    %101 = vector.load %arg1[%100, %c0_42, %c0_43] : memref<4x8x8xbf16, #tpu.memory_space<vmem>>, vector<1x8x8xbf16>
    %102 = vector.shape_cast %101 : vector<1x8x8xbf16> to vector<8x8xbf16>
    %103 = arith.index_cast %c3_i32 : i32 to index
    %c0_44 = arith.constant 0 : index
    %c0_45 = arith.constant 0 : index
    %104 = vector.load %arg2[%103, %c0_44, %c0_45] : memref<4x8x8xbf16, #tpu.memory_space<vmem>>, vector<1x8x8xbf16>
    %105 = vector.shape_cast %104 : vector<1x8x8xbf16> to vector<8x8xbf16>
    %106 = arith.index_cast %c3_i32 : i32 to index
    %c0_46 = arith.constant 0 : index
    %c0_47 = arith.constant 0 : index
    %107 = vector.load %arg3[%106, %c0_46, %c0_47] : memref<4x8x8xbf16, #tpu.memory_space<vmem>>, vector<1x8x8xbf16>
    %108 = vector.shape_cast %107 : vector<1x8x8xbf16> to vector<8x8xbf16>
    %cst_48 = arith.constant dense<0.000000e+00> : vector<8x8xf32>
    %109 = tpu.matmul %102, %105, %cst_48 {dimension_numbers = #tpu.dot_dimension_numbers<[1], [1], [0], [0], [0, 0, 1, 0], [], []>} : vector<8x8xbf16>, vector<8x8xbf16>, vector<8x8xf32> -> vector<8x8xf32>
    %110 = vector.shape_cast %2 : vector<8x1xi1> to vector<8x1xi1>
    %111 = vector.broadcast %110 : vector<8x1xi1> to vector<8x8xi1>
    %112 = vector.broadcast %cst_2 : f32 to vector<8x8xf32>
    %113 = arith.select %111, %112, %109 : vector<8x8xi1>, vector<8x8xf32>
    %cst_49 = arith.constant dense<0xFF800000> : vector<8xf32>
    %114 = vector.multi_reduction <maximumf>, %113, %cst_49 [1] : vector<8x8xf32> to vector<8xf32>
    %115 = vector.shape_cast %114 : vector<8xf32> to vector<8x1xf32>
    %116 = vector.broadcast %115 : vector<8x1xf32> to vector<8x8xf32>
    %117 = arith.subf %113, %116 : vector<8x8xf32>
    %118 = math.exp %117 : vector<8x8xf32>
    %cst_50 = arith.constant dense<0.000000e+00> : vector<8xf32>
    %119 = vector.multi_reduction <add>, %118, %cst_50 [1] : vector<8x8xf32> to vector<8xf32>
    %120 = vector.shape_cast %119 : vector<8xf32> to vector<8x1xf32>
    %121 = tpu.reciprocal %120 {approx = true} : vector<8x1xf32> -> vector<8x1xf32>
    %122 = vector.broadcast %121 : vector<8x1xf32> to vector<8x8xf32>
    %123 = arith.mulf %118, %122 : vector<8x8xf32>
    %124 = arith.truncf %123 : vector<8x8xf32> to vector<8x8xbf16>
    %cst_51 = arith.constant dense<0.000000e+00> : vector<8x8xf32>
    %125 = tpu.matmul %124, %108, %cst_51 {dimension_numbers = #tpu.dot_dimension_numbers<[1], [0], [0], [1], [0, 0, 1, 1], [], []>} : vector<8x8xbf16>, vector<8x8xbf16>, vector<8x8xf32> -> vector<8x8xf32>
    %126 = arith.truncf %125 : vector<8x8xf32> to vector<8x8xbf16>
    %127 = arith.index_cast %c3_i32 : i32 to index
    %c0_52 = arith.constant 0 : index
    %c0_53 = arith.constant 0 : index
    %128 = vector.load %arg5[%127, %c0_52, %c0_53] : memref<4x8x32xbf16, #tpu.memory_space<vmem>>, vector<1x8x32xbf16>
    %129 = vector.shape_cast %128 : vector<1x8x32xbf16> to vector<8x32xbf16>
    %cst_54 = arith.constant dense<0.000000e+00> : vector<8x32xf32>
    %130 = tpu.matmul %126, %129, %cst_54 {dimension_numbers = #tpu.dot_dimension_numbers<[1], [0], [0], [1], [0, 0, 1, 1], [], []>} : vector<8x8xbf16>, vector<8x32xbf16>, vector<8x32xf32> -> vector<8x32xf32>
    %131 = arith.addf %99, %130 : vector<8x32xf32>
    %c4_i32 = arith.constant 4 : i32
    %c0_55 = arith.constant 0 : index
    %c0_56 = arith.constant 0 : index
    %132 = vector.load %arg6[%c0_55, %c0_56] : memref<1x32xf32, #tpu.memory_space<vmem>>, vector<1x32xf32>
    %133 = vector.broadcast %132 : vector<1x32xf32> to vector<8x32xf32>
    %134 = arith.addf %131, %133 : vector<8x32xf32>
    %c0_57 = arith.constant 0 : index
    %c0_58 = arith.constant 0 : index
    %135 = vector.load %arg7[%c0_57, %c0_58] : memref<8x32xf32, #tpu.memory_space<vmem>>, vector<8x32xf32>
    tpu.vector_store %arg7[%c0_57, %c0_58], %134 {strides = array<i32>} : memref<8x32xf32, #tpu.memory_space<vmem>>, vector<8x32xf32>,
    return
  }
  func.func @transform_0(%arg0: i32) -> (i32, i32, i32) {
    %c0_i32 = arith.constant 0 : i32
    %c0_i32_0 = arith.constant 0 : i32
    %c0_i32_1 = arith.constant 0 : i32
    return %c0_i32, %arg0, %c0_i32_0 : i32, i32, i32
  }
  func.func @transform_1(%arg0: i32) -> (i32, i32, i32) {
    %c0_i32 = arith.constant 0 : i32
    %c0_i32_0 = arith.constant 0 : i32
    %c0_i32_1 = arith.constant 0 : i32
    %c0_i32_2 = arith.constant 0 : i32
    return %c0_i32, %c0_i32_0, %c0_i32_1 : i32, i32, i32
  }
  func.func @transform_2(%arg0: i32) -> (i32, i32, i32) {
    %c0_i32 = arith.constant 0 : i32
    %c0_i32_0 = arith.constant 0 : i32
    %c0_i32_1 = arith.constant 0 : i32
    %c0_i32_2 = arith.constant 0 : i32
    return %c0_i32, %c0_i32_0, %c0_i32_1 : i32, i32, i32
  }
  func.func @transform_3(%arg0: i32) -> (i32, i32) {
    %c0_i32 = arith.constant 0 : i32
    %c0_i32_0 = arith.constant 0 : i32
    return %arg0, %c0_i32 : i32, i32
  }
  func.func @transform_4(%arg0: i32) -> (i32, i32, i32) {
    %c0_i32 = arith.constant 0 : i32
    %c0_i32_0 = arith.constant 0 : i32
    %c0_i32_1 = arith.constant 0 : i32
    %c0_i32_2 = arith.constant 0 : i32
    return %c0_i32, %c0_i32_0, %c0_i32_1 : i32, i32, i32
  }
  func.func @transform_5(%arg0: i32) -> (i32, i32) {
    %c0_i32 = arith.constant 0 : i32
    %c0_i32_0 = arith.constant 0 : i32
    %c0_i32_1 = arith.constant 0 : i32
    return %c0_i32, %c0_i32_0 : i32, i32
  }
  func.func @transform_6(%arg0: i32) -> (i32, i32) {
    %c0_i32 = arith.constant 0 : i32
    %c0_i32_0 = arith.constant 0 : i32
    return %arg0, %c0_i32 : i32, i32
  }
}

</mosaic_0001>

<bundles_post_ra>
// kernel: tpu_custom_call.1
= control target key start
LH: loop header
LB: loop body
LE: loop exit
PB: predicated region body
PF: predicated region fallthrough
CT: control target
= control target key end

     0   :  { %11 = vsyncpa [#allocation3], 0  ;;  %s710_s0 = inlined_call_operand.hbm [shape: bf16[4,8,8], index: 0, kind: input, shape index: {}]   ;;  %s711_s1 = inlined_call_operand.hbm [shape: bf16[4,8,8], index: 1, kind: input, shape index: {}]   ;;  %s712_s2 = inlined_call_operand.hbm [shape: bf16[4,8,8], index: 2, kind: input, shape index: {}]   ;;  %s713_s3 = inlined_call_operand.vmem [shape: f32[8,1], index: 3, kind: input, shape index: {}]   ;;  %s714_s4 = inlined_call_operand.hbm [shape: bf16[4,8,32], index: 4, kind: input, shape index: {}]   ;;  %s715_s5 = inlined_call_operand.vmem [shape: f32[1,32], index: 5, kind: input, shape index: {}]   ;;  %s716_s6 = inlined_call_operand.hbm [shape: f32[8,32], index: 6, kind: output, shape index: {}]  }
   0x1   :  { %12 = vsyncpa [#allocation6], 0 }
   0x2   :  { %13 = vsyncpa [#allocation9], 0 }
   0x3   :  { %14 = vsyncpa [#allocation4], 0  ;;  %s32_s23 = sshll.u32 %s711_s1, 4  ;;  %s603_s24 = smov [#allocation5]   ;;  %s33_s23 = int_to_ptr.hbm [resolvable:$true] %s32_s23 }
   0x4   :  { %s34_s25 = sshll.u32 %s603_s24, 4  ;;  %s19_s28 = sshll.u32 %s710_s0, 4  ;;  %s35_s25 = int_to_ptr.vmem [resolvable:$true] %s34_s25  ;;  %s20_s28 = int_to_ptr.hbm [resolvable:$true] %s19_s28 }
   0x5   :  { %s604_s29 = smov 64   ;;  %s605_s30 = smov 4  }
   0x6   :  { %40 = dma.hbm_to_vmem [thread:$0]  %s33_s23, 256, %s35_s25, [#allocation6], %s604_s29, %s604_s29, %s605_s30  }
   0x7   :  { %s606_s7 = smov [#allocation2]   ;;  %s45_s11 = sshll.u32 %s712_s2, 4  ;;  %s46_s11 = int_to_ptr.hbm [resolvable:$true] %s45_s11 }
   0x8   :  { %s21_s8 = sshll.u32 %s606_s7, 4  ;;  %s60_s13 = sshll.u32 %s714_s4, 4  ;;  %s22_s8 = int_to_ptr.vmem [resolvable:$true] %s21_s8  ;;  %s61_s13 = int_to_ptr.hbm [resolvable:$true] %s60_s13 }
   0x9   :  { %27 = dma.hbm_to_vmem [thread:$0]  %s20_s28, 256, %s22_s8, [#allocation3], %s604_s29, %s604_s29, %s605_s30  }
   0xa   :  { %s607_s14 = smov [#allocation7]   ;;  %s608_s0 = smov [#allocation8]  }
   0xb   :  { %s47_s15 = sshll.u32 %s607_s14, 4  ;;  %s62_s16 = sshll.u32 %s608_s0, 4  ;;  %s48_s15 = int_to_ptr.vmem [resolvable:$true] %s47_s15  ;;  %s63_s16 = int_to_ptr.vmem [resolvable:$true] %s62_s16 }
   0xc   :  { %53 = dma.hbm_to_vmem [thread:$0]  %s46_s11, 256, %s48_s15, [#allocation6], %s604_s29, %s604_s29, %s605_s30  }
   0xd   :  { %68 = dma.hbm_to_vmem [thread:$0]  %s61_s13, 256, %s63_s16, [#allocation9], %s604_s29, %s604_s29, %s605_s30  }
   0xe   :  { %595 = dma.done.wait [#allocation3], 256  }
   0xf   :  { %596 = vsyncadd [#allocation3], 4294967040 }
  0x10   :  { %597 = dma.done.wait [#allocation6], 512  }
  0x11   :  { %598 = vsyncadd [#allocation6], 4294966784 }
  0x12   :  { %599 = dma.done.wait [#allocation9], 256  }
  0x13   :  { %600 = vsyncadd [#allocation9], 4294967040  ;;  %v609_v0 = vmov 0   ;;  %vm93_vm0 = vcmask 64512   ;;  %v91_v1 = vld [vmem:[#allocation5] sm:$0xf] }
  0x14   :  { %457 = vset.pattern.permute.xlu0 %v609_v0  ;;  %v156_v2 = vld [vmem:[#allocation5 + $0x4] sm:$0xf]  ;;  %v98_v3 = vsel %vm93_vm0, %v91_v1, 0  ;;  %v254_v5 = vld [vmem:[#allocation5 + $0x8] sm:$0xf]  ;;  %v88_v7 = vld [vmem:[%s713_s3] sm:$0xff] }
  0x15   :  { %v163_v4 = vsel %vm93_vm0, %v156_v2, 0  ;;  %107 = vmatpush.bf16.xpose.msra.mxu0 %v98_v3  ;;  %v261_v6 = vsel %vm93_vm0, %v254_v5, 0  ;;  %vm89_vm1 = vcmp.eq.f32.partialorder %v88_v7, 0.0  ;;  %v90_v9 = vld [vmem:[#allocation2] sm:$0xf]  ;;  %vm134_vm3 = vcmask 1043456  }
  0x16   :  { %172 = vmatpush.bf16.xpose.msra.mxu2 %v163_v4  ;;  %v113_v8 = vsel %vm89_vm1, 1, %v609_v0  ;;  %v154_v10 = vld [vmem:[#allocation2 + $0x4] sm:$0xf]  ;;  %v252_v11 = vld [vmem:[#allocation2 + $0x8] sm:$0xf]  ;;  %s610_s18 = smov [#allocation10]  }
  0x17   :  { %115 = vperm.xlu0 %457, %v113_v8   ;;  %v92_v28 = vld [vmem:[#allocation7] sm:$0xf]  ;;  %v158_v41 = vld [vmem:[#allocation7 + $0x4] sm:$0xf]  ;;  %v152_v43 = vld [vmem:[#allocation8] sm:$0xf] }
  0x18   :  { %v136_v29 = vsel %vm134_vm3, %v92_v28, 0  ;;  %v195_v42 = vsel %vm134_vm3, %v158_v41, 0  ;;  %v236_v44 = vsel %vm134_vm3, %v152_v43, 0  ;;  %v334_v48 = vld [vmem:[#allocation5 + $0xc] sm:$0xf]  ;;  %s423_s19 = sshll.u32 %s610_s18, 4  ;;  %s424_s19 = int_to_ptr.vmem [resolvable:$true] %s423_s19 }
  0x19   :  { %145 = vmatpush.bf16.msra.mxu1 %v136_v29  ;;  %204 = vmatpush.bf16.msra.mxu3 %v195_v42  ;;  %v341_v54 = vsel %vm93_vm0, %v334_v48, 0  ;;  %v332_v59 = vld [vmem:[#allocation2 + $0xc] sm:$0xf]  ;;  %v212_v60 = vld [vmem:[#allocation8 + $0x4] sm:$0xf]  ;;  %s425_s22 = sshll.u32 %s716_s6, 4  ;;  %s426_s22 = int_to_ptr.hbm [resolvable:$true] %s425_s22 }
  0x1a   :  { %v217_v61 = vsel %vm134_vm3, %v212_v60, 0  ;;  %v256_v62 = vld [vmem:[#allocation7 + $0x8] sm:$0xf]  ;;  %vm416_vm4 = vcmask 261120  }
  0x1b   :  { %v293_v63 = vsel %vm134_vm3, %v256_v62, 0 }
  0x1c   :  { %437 = vmatmul.msk.bf16.vlgmr.msra.gmra.mxu0 %vm93_vm0, %v90_v9 }
  0x1d   :  { %270 = vmatpush.bf16.xpose.msrb.mxu0 %v261_v6  ;;  %439 = vmatmul.msk.bf16.vlgmr.msra.gmra.mxu2 %vm93_vm0, %v154_v10 }
  0x1e   :  { %245 = vmatpush.bf16.msrb.mxu3 %v236_v44  ;;  %226 = vmatpush.bf16.msrb.mxu1 %v217_v61 }
  0x1f   :  { %302 = vmatpush.bf16.msrb.mxu2 %v293_v63 }
  0x2c   :  { %443 = vmatmul.msk.bf16.vlgmr.msrb.gmra.mxu0 %vm93_vm0, %v252_v11 }
  0x89   :  { %v667_v12 = vpop.permute.xlu0 %115 }
  0x8a   :  { %vm117_vm2 = vcmp.eq.s32.totalorder %v667_v12, 1 }
  0x99   :  { %v109_v13 = vpop.f32.mrf.mxu0 }
  0x9a   :  { %v118_v14 = vsel %vm117_vm2, -1e+20, %v109_v13 }
  0x9b   :  { %v119_v15 = vsel %vm93_vm0, %v118_v14, -inf }
  0x9c   :  { %120 = vmax.xlane.f32.xlu0 %v119_v15 }
  0xa0   :  { %v174_v16 = vpop.f32.mrf.mxu2 }
  0xa1   :  { %v111_v17 = vpop.f32.mrf.mxu0  ;;  %v178_v26 = vsel %vm117_vm2, -1e+20, %v174_v16 }
  0xa2   :  { %v179_v27 = vsel %vm93_vm0, %v178_v26, -inf }
  0xa8   :  { %v176_v18 = vpop.f32.mrf.mxu2 }
  0xa9   :  { %v272_v19 = vpop.f32.mrf.mxu0 }
  0xaa   :  { %v276_v39 = vsel %vm117_vm2, -1e+20, %v272_v19 }
  0xab   :  { %v277_v40 = vsel %vm93_vm0, %v276_v39, -inf }
  0xb1   :  { %v274_v20 = vpop.f32.mrf.mxu0 }
 0x10f   :  { %v121_v21 = vpop.xlane.xlu0 %120 }
 0x110   :  { %v122_v22 = vsub.f32 %v118_v14, %v121_v21  ;;  %v310_v14 = vld [vmem:[#allocation8 + $0x8] sm:$0xf] }
 0x111   :  { %v315_v15 = vsel %vm134_vm3, %v310_v14, 0 }
 0x112   :  { %v123_v23 = vmul.f32 1.442695, %v122_v22 }
 0x114   :  { %459 = vpow2.f32 %v123_v23 }
 0x11a   :  { %v460_v24 = vpop.eup %459 }
 0x11b   :  { %v125_v25 = vsel %vm93_vm0, %v460_v24, 0.0 }
 0x11c   :  { %126 = vadd.xlane.f32.xlu1 %v125_v25  ;;  %v336_v25 = vld [vmem:[#allocation7 + $0xc] sm:$0xf] }
 0x124   :  { %180 = vmax.xlane.f32.xlu1 %v179_v27  ;;  %v390_v27 = vld [vmem:[#allocation8 + $0xc] sm:$0xf] }
 0x125   :  { %v395_v28 = vsel %vm134_vm3, %v390_v27, 0 }
 0x126   :  { %404 = vmatpush.bf16.msra.mxu2 %v395_v28 }
 0x18f   :  { %v127_v30 = vpop.xlane.xlu1 %126 }
 0x190   :  { %461 = vrcp.f32 %v127_v30 }
 0x196   :  { %v462_v31 = vpop.eup %461 }
 0x197   :  { %v181_v32 = vpop.xlane.xlu1 %180  ;;  %v129_v33 = vmul.f32 %v462_v31, %v460_v24 }
 0x198   :  { %v182_v34 = vsub.f32 %v178_v26, %v181_v32  ;;  %v373_v26 = vsel %vm134_vm3, %v336_v25, 0 }
 0x199   :  { %v130_v35 = vpack.c.bf16 %v129_v33, %v129_v33  ;;  %382 = vmatpush.bf16.msra.mxu0 %v373_v26 }
 0x19a   :  { %v183_v36 = vmul.f32 1.442695, %v182_v34 }
 0x19b   :  { %438 = vmatmul.msk.bf16.vlgmr.msra.gmra.mxu1 %vm93_vm0, %v130_v35 }
 0x19c   :  { %463 = vpow2.f32 %v183_v36  ;;  %324 = vmatpush.bf16.msra.mxu1 %v315_v15 }
 0x1a2   :  { %v464_v37 = vpop.eup %463 }
 0x1a3   :  { %v185_v38 = vsel %vm93_vm0, %v464_v37, 0.0 }
 0x1a4   :  { %186 = vadd.xlane.f32.xlu2 %v185_v38 }
 0x1ac   :  { %278 = vmax.xlane.f32.xlu2 %v277_v40  ;;  %v458_v40 = vld [vmem:[%s715_s5] ss:$0 sm:$0xff] }
 0x217   :  { %v187_v45 = vpop.xlane.xlu2 %186 }
 0x218   :  { %465 = vrcp.f32 %v187_v45  ;;  %v147_v46 = vpop.f32.mrf.mxu1 }
 0x219   :  { %v151_v58 = vpack.c.bf16 %v147_v46, %v147_v46 }
 0x21e   :  { %v466_v47 = vpop.eup %465 }
 0x21f   :  { %v279_v49 = vpop.xlane.xlu2 %278  ;;  %v189_v50 = vmul.f32 %v466_v47, %v464_v37 }
 0x220   :  { %v280_v51 = vsub.f32 %v276_v39, %v279_v49  ;;  %v149_v52 = vpop.f32.mrf.mxu1 }
 0x221   :  { %v190_v53 = vpack.c.bf16 %v189_v50, %v189_v50 }
 0x222   :  { %v281_v55 = vmul.f32 1.442695, %v280_v51 }
 0x223   :  { %440 = vmatmul.msk.bf16.vlgmr.msra.gmra.mxu3 %vm93_vm0, %v190_v53 }
 0x224   :  { %467 = vpow2.f32 %v281_v55  ;;  %350 = vmatpush.bf16.xpose.msra.mxu3 %v341_v54 }
 0x22a   :  { %v468_v56 = vpop.eup %467 }
 0x22b   :  { %v283_v57 = vsel %vm93_vm0, %v468_v56, 0.0 }
 0x22c   :  { %284 = vadd.xlane.f32.xlu2 %v283_v57 }
 0x233   :  { %442 = vmatmul.msk.bf16.vlgmr.msrb.gmra.mxu3 %vm93_vm0, %v151_v58 }
 0x243   :  { %446 = vmatmul.msk.bf16.vlgmr.msra.gmra.mxu3 %vm93_vm0, %v332_v59 }
 0x29f   :  { %v285_v0 = vpop.xlane.xlu2 %284 }
 0x2a0   :  { %469 = vrcp.f32 %v285_v0 }
 0x2a6   :  { %v470_v1 = vpop.eup %469  ;;  %v206_v2 = vpop.f32.mrf.mxu3 }
 0x2a7   :  { %v287_v3 = vmul.f32 %v470_v1, %v468_v56  ;;  %v210_v4 = vpack.c.bf16 %v206_v2, %v206_v2 }
 0x2a9   :  { %v288_v5 = vpack.c.bf16 %v287_v3, %v287_v3  ;;  %441 = vmatmul.msk.bf16.vlgmr.msrb.gmra.mxu1 %vm93_vm0, %v210_v4 }
 0x2ab   :  { %444 = vmatmul.msk.bf16.vlgmr.msrb.gmra.mxu2 %vm93_vm0, %v288_v5 }
 0x2ae   :  { %v208_v6 = vpop.f32.mrf.mxu3 }
 0x2b6   :  { %v247_v7 = vpop.f32.mrf.mxu3 }
 0x2be   :  { %v249_v8 = vpop.f32.mrf.mxu3 }
 0x2c6   :  { %v352_v9 = vpop.f32.mrf.mxu3 }
 0x2c7   :  { %v356_v10 = vsel %vm117_vm2, -1e+20, %v352_v9 }
 0x2c8   :  { %v357_v11 = vsel %vm93_vm0, %v356_v10, -inf }
 0x2c9   :  { %358 = vmax.xlane.f32.xlu1 %v357_v11 }
 0x2ce   :  { %v354_v13 = vpop.f32.mrf.mxu3 }
 0x326   :  { %v228_v16 = vpop.f32.mrf.mxu1 }
 0x327   :  { %v248_v29 = vadd.f32 %v247_v7, %v228_v16 }
 0x32e   :  { %v230_v17 = vpop.f32.mrf.mxu1  ;;  %v304_v18 = vpop.f32.mrf.mxu2 }
 0x32f   :  { %v308_v19 = vpack.c.bf16 %v304_v18, %v304_v18 }
 0x331   :  { %445 = vmatmul.msk.bf16.vlgmr.msra.gmra.mxu1 %vm93_vm0, %v308_v19 }
 0x336   :  { %v306_v20 = vpop.f32.mrf.mxu2 }
 0x33c   :  { %v359_v21 = vpop.xlane.xlu1 %358 }
 0x33d   :  { %v360_v22 = vsub.f32 %v356_v10, %v359_v21 }
 0x33f   :  { %v361_v23 = vmul.f32 1.442695, %v360_v22 }
 0x341   :  { %471 = vpow2.f32 %v361_v23 }
 0x347   :  { %v472_v12 = vpop.eup %471 }
 0x348   :  { %v363_v24 = vsel %vm93_vm0, %v472_v12, 0.0 }
 0x349   :  { %364 = vadd.xlane.f32.xlu1 %v363_v24 }
 0x3ae   :  { %v326_v30 = vpop.f32.mrf.mxu1 }
 0x3af   :  { %v330_v31 = vadd.f32 %v326_v30, %v248_v29 }
 0x3b6   :  { %v328_v32 = vpop.f32.mrf.mxu1 }
 0x3bc   :  { %v365_v33 = vpop.xlane.xlu1 %364 }
 0x3bd   :  { %473 = vrcp.f32 %v365_v33 }
 0x3c3   :  { %v474_v34 = vpop.eup %473 }
 0x3c4   :  { %v367_v35 = vmul.f32 %v474_v34, %v472_v12 }
 0x3c6   :  { %v368_v36 = vpack.c.bf16 %v367_v35, %v367_v35 }
 0x3c8   :  { %447 = vmatmul.msk.bf16.vlgmr.msra.gmra.mxu0 %vm93_vm0, %v368_v36 }
 0x445   :  { %v384_v37 = vpop.f32.mrf.mxu0 }
 0x446   :  { %v388_v38 = vpack.c.bf16 %v384_v37, %v384_v37 }
 0x448   :  { %448 = vmatmul.msk.bf16.vlgmr.msra.gmra.mxu2 %vm93_vm0, %v388_v38 }
 0x44d   :  { %v386_v39 = vpop.f32.mrf.mxu0 }
 0x4cb   :  { %v406_v41 = vpop.f32.mrf.mxu2 }
 0x4cc   :  { %v410_v42 = vadd.f32 %v406_v41, %v330_v31 }
 0x4ce   :  { %v415_v43 = vadd.f32 %v458_v40, %v410_v42 }
 0x4d0   :  { %417 = vst.msk [vmem:[#allocation10] sm:$0xff] %vm416_vm4, %v415_v43 }
 0x4d1   :  { %428 = dma.vmem_to_hbm [thread:$0]  %s424_s19, 128, %s426_s22, [#allocation4]  }
 0x4d3   :  { %v408_v44 = vpop.f32.mrf.mxu2 }
 0x4d4   :  { %601 = dma.done.wait [#allocation4], 128  }
 0x4d5   :  { %602 = vsyncadd [#allocation4], 4294967168 }
 0x4d6   :  { %433 = vsyncpa [#allocation3], 1 }
 0x4d7   :  { %434 = vsyncpa [#allocation6], 1 }
 0x4d8   :  { %435 = vsyncpa [#allocation9], 1 }
 0x4d9   :  { %436 = vsyncpa [#allocation4], 1 }

</bundles_post_ra>
